<compile_context>
chip_gen: v7x
topology: tpu7x:2x2x1
jax: 0.10.0
libtpu: 0.0.40
codegen_flags: <defaults>
</compile_context>

<pallas_src>
import functools

import jax
import jax.numpy as jnp
from jax.experimental import pallas as pl
from jax.experimental.pallas import tpu as pltpu


# --------------------------------------------------------------------------- #
# Kernel bodies
# --------------------------------------------------------------------------- #
def _segment_mean(x_ref, x32_ref, tile_groups, segment_count):
    """Per-group mean over S consecutive rows, f32 accumulation on the VPU.

    x_ref holds a (tile_groups*S, E) bf16 tile; it is upcast once into the f32
    VMEM scratch x32_ref (cheap, hidden under the HBM DMA).  Row s of every
    group is the strided sublane slice (start=s, size=tile_groups, stride=S),
    so summing the S slices yields the per-group sum with no XLU reduce.
    """
    x32_ref[...] = x_ref[...].astype(jnp.float32)
    acc = x32_ref[pl.ds(0, tile_groups, stride=segment_count), :]
    for s in range(1, segment_count):  # static unroll; S is small in practice
        acc = acc + x32_ref[pl.ds(s, tile_groups, stride=segment_count), :]
    return acc * (1.0 / segment_count)


def _classifier_kernel_mlp(x_ref, w1_ref, w2_ref, o_ref, x32_ref, *, segment_count):
    # x_ref: (TG*S, E) bf16 | w1_ref: (E, E) bf16 | w2_ref: (E, C_pad) bf16
    # o_ref: (TG, C_pad) bf16 | x32_ref: (TG*S, E) f32 scratch
    tg = o_ref.shape[0]
    feats = _segment_mean(x_ref, x32_ref, tg, segment_count)           # (TG, E) f32
    h = jnp.dot(feats.astype(jnp.bfloat16), w1_ref[...],
                preferred_element_type=jnp.float32)                    # lin1, NN layout
    h = jnp.maximum(h, 0.0)                                            # ReLU in f32 (VPU)
    logits = jnp.dot(h.astype(jnp.bfloat16), w2_ref[...],
                     preferred_element_type=jnp.float32)               # lin2, NN layout
    o_ref[...] = logits.astype(o_ref.dtype)


def _classifier_kernel_linear(x_ref, w2_ref, o_ref, x32_ref, *, segment_count):
    tg = o_ref.shape[0]
    feats = _segment_mean(x_ref, x32_ref, tg, segment_count)
    logits = jnp.dot(feats.astype(jnp.bfloat16), w2_ref[...],
                     preferred_element_type=jnp.float32)
    o_ref[...] = logits.astype(o_ref.dtype)


# --------------------------------------------------------------------------- #
# Tile selection (VMEM-aware)
# --------------------------------------------------------------------------- #
def _tile_vmem_bytes(tg, segment_count, enc_dim, c_pad, is_mlp):
    """Estimated VMEM footprint for a tile of `tg` groups (bytes)."""
    x_bf16 = tg * segment_count * enc_dim * 2       # per pipeline buffer
    x_f32 = tg * segment_count * enc_dim * 4        # pooling scratch (single buffer)
    out_blk = tg * c_pad * 2                        # per pipeline buffer (bf16)
    w = enc_dim * c_pad * 2 + (enc_dim * enc_dim * 2 if is_mlp else 0)
    # x and out blocks are double-buffered; constant-index weights still get 2 bufs.
    return 2 * x_bf16 + x_f32 + 2 * out_blk + 2 * w


def _pick_group_tile(groups, segment_count, enc_dim, c_pad, is_mlp,
                     *, vmem_budget=24 * 2 ** 20, max_tg=2048):
    """Largest 8-aligned group tile (<= max_tg) that fits the VMEM budget.

    Budget (24 MiB) keeps the footprint safe on every generation once
    vmem_limit_bytes is raised (v5e/v6e 128 MiB physical, v7x 64 MiB physical).
    """
    fixed = _tile_vmem_bytes(0, segment_count, enc_dim, c_pad, is_mlp)
    per_group = _tile_vmem_bytes(1, segment_count, enc_dim, c_pad, is_mlp) - fixed
    avail = max(vmem_budget - fixed, 8 * per_group)      # degrade gracefully
    tg = max(8, min(max_tg, avail // per_group) // 8 * 8)
    groups_aligned = -(-groups // 8) * 8
    tg = min(tg, groups_aligned)
    # Prefer >= 2 grid steps when possible so the "parallel" axis actually shards
    # across v7x's two TensorCores (harmless elsewhere).
    if groups_aligned >= 16 and tg >= groups_aligned:
        tg = max(8, -(-(groups_aligned // 2) // 8) * 8)
    return tg


# --------------------------------------------------------------------------- #
# Wrapper
# --------------------------------------------------------------------------- #
@functools.partial(jax.jit, static_argnames=("segment_count", "is_mlp"))
def classifier_forward(x, w1, w2, *, segment_count, is_mlp):
    """x: (groups*segment_count, E); w1: (E, E), w2: (C, E) in torch (out, in) layout.

    Precision contract: x, weights and MXU operands are bf16 (f32 accumulation);
    pooling accumulates in f32; logits are stored bf16 and returned as f32.
    """
    num_rows, enc_dim = x.shape
    assert num_rows % segment_count == 0
    groups = num_rows // segment_count
    class_count = w2.shape[0]
    c_pad = -(-class_count // 128) * 128

    # bf16 HBM streams (x dominates the DMA traffic in this kernel).
    x_bf = x.astype(jnp.bfloat16)
    # One-time transpose to (in, out) so the kernel's dots are plain NN contractions
    # on the MXU (no chance of a per-grid-step weight transpose in the body).
    w2t = w2.T.astype(jnp.bfloat16)                              # (E, C)
    if c_pad != class_count:
        # Zero-pad the out-dim so the kernel's store is a lane-dense, unmasked vst.
        w2t = jnp.pad(w2t, ((0, 0), (0, c_pad - class_count)))

    tg = _pick_group_tile(groups, segment_count, enc_dim, c_pad, is_mlp)
    n_tiles = pl.cdiv(groups, tg)
    groups_pad = n_tiles * tg
    if groups_pad != groups:
        # Remainder handling: pad with zero rows (zero features -> zero logits,
        # no bias), keep the fast tiled path for any group count, slice after.
        x_bf = jnp.pad(x_bf, ((0, (groups_pad - groups) * segment_count), (0, 0)))

    x_spec = pl.BlockSpec((tg * segment_count, enc_dim), lambda i: (i, 0))
    w1_spec = pl.BlockSpec((enc_dim, enc_dim), lambda i: (0, 0))      # resident
    w2_spec = pl.BlockSpec((enc_dim, c_pad), lambda i: (0, 0))        # resident
    out_spec = pl.BlockSpec((tg, c_pad), lambda i: (i, 0))
    out_shape = jax.ShapeDtypeStruct((groups_pad, c_pad), jnp.bfloat16)
    scratch = [pltpu.VMEM((tg * segment_count, enc_dim), jnp.float32)]

    est = _tile_vmem_bytes(tg, segment_count, enc_dim, c_pad, is_mlp)
    vmem_limit = int(min(48 * 2 ** 20, max(32 * 2 ** 20, est + est // 2)))
    params = pltpu.CompilerParams(dimension_semantics=("parallel",),
                                  vmem_limit_bytes=vmem_limit)

    if is_mlp:
        w1t = w1.T.astype(jnp.bfloat16)                              # (E, E)
        out = pl.pallas_call(
            functools.partial(_classifier_kernel_mlp, segment_count=segment_count),
            out_shape=out_shape,
            grid=(n_tiles,),
            in_specs=[x_spec, w1_spec, w2_spec],
            out_specs=out_spec,
            scratch_shapes=scratch,
            compiler_params=params,
        )(x_bf, w1t, w2t)
    else:
        out = pl.pallas_call(
            functools.partial(_classifier_kernel_linear, segment_count=segment_count),
            out_shape=out_shape,
            grid=(n_tiles,),
            in_specs=[x_spec, w2_spec],
            out_specs=out_spec,
            scratch_shapes=scratch,
            compiler_params=params,
        )(x_bf, w2t)

    # Slice away class/group padding; return f32 like the torch module.
    return out[:groups, :class_count].astype(jnp.float32)


# --------------------------------------------------------------------------- #
# Pure-JAX reference (f32) and self-test
# --------------------------------------------------------------------------- #
def _reference_forward(x, w1, w2, segment_count, is_mlp):
    groups = x.shape[0] // segment_count
    feats = x.reshape(groups, segment_count, -1).mean(axis=1)
    if is_mlp:
        h = jnp.maximum(feats @ w1.T, 0.0)
        return h @ w2.T
    return feats @ w2.T


if __name__ == "__main__":
    def _run_case(groups, segment_count, encoding_dim, class_count, seed):
        key = jax.random.PRNGKey(seed)
        kx, k1, k2 = jax.random.split(key, 3)
        x = jax.random.normal(kx, (groups * segment_count, encoding_dim), jnp.float32)
        # torch nn.Linear(bias=False) weight layout: (out, in).
        w1 = jax.random.normal(k1, (encoding_dim, encoding_dim), jnp.float32) * 0.05
        w2 = jax.random.normal(k2, (class_count, encoding_dim), jnp.float32) * 0.05
        for is_mlp in (True, False):
            out = classifier_forward(x, w1, w2,
                                     segment_count=segment_count, is_mlp=is_mlp)
            jax.block_until_ready(out)
            ref = _reference_forward(x, w1, w2, segment_count, is_mlp)
            assert out.shape == (groups, class_count)
            # Tolerance loosened vs the pure-f32 reference: x / MXU operands /
            # stored logits are bf16 (all accumulation in f32).
            err = float(jnp.max(jnp.abs(out - ref)))
            assert jnp.allclose(out, ref, atol=3e-2, rtol=5e-2), err

    # Small shapes consistent with the module: G=8, S=4, E=128, C=16.
    _run_case(groups=8, segment_count=4, encoding_dim=128, class_count=16, seed=0)
    # Non-dividing group count: exercises remainder zero-padding + a 2-step grid.
    _run_case(groups=20, segment_count=4, encoding_dim=128, class_count=10, seed=0)

    print("KERNEL_OK")
</pallas_src>

<mosaic_0001>
module attributes {stable_mosaic.version = 11 : i64} {
  func.func @_classifier_kernel_mlp(%arg0: i32, %arg1: memref<32x128xbf16, #tpu.memory_space<vmem>>, %arg2: memref<128x128xbf16, #tpu.memory_space<vmem>>, %arg3: memref<128x128xbf16, #tpu.memory_space<vmem>>, %arg4: memref<8x128xbf16, #tpu.memory_space<vmem>>, %arg5: memref<32x128xf32, #tpu.memory_space<vmem>>) attributes {dimension_semantics = [#tpu.dimension_semantics<parallel>], iteration_bounds = array<i64: 1>, scalar_prefetch = 0 : i64, scratch_operands = 1 : i64, tpu.core_type = #tpu.core_type<tc>, window_params = [{transform_indices = @transform_0, window_bounds = array<i64: 32, 128>}, {pipeline_mode = #tpu.pipeline_mode<synchronous>, transform_indices = @transform_1, window_bounds = array<i64: 128, 128>}, {pipeline_mode = #tpu.pipeline_mode<synchronous>, transform_indices = @transform_2, window_bounds = array<i64: 128, 128>}, {transform_indices = @transform_3, window_bounds = array<i64: 8, 128>}]} {
    %c0 = arith.constant 0 : index
    %c0_0 = arith.constant 0 : index
    %0 = vector.load %arg1[%c0, %c0_0] : memref<32x128xbf16, #tpu.memory_space<vmem>>, vector<32x128xbf16>
    %1 = arith.extf %0 : vector<32x128xbf16> to vector<32x128xf32>
    %c0_1 = arith.constant 0 : index
    %c0_2 = arith.constant 0 : index
    %2 = vector.load %arg5[%c0_1, %c0_2] : memref<32x128xf32, #tpu.memory_space<vmem>>, vector<32x128xf32>
    tpu.vector_store %arg5[%c0_1, %c0_2], %1 {strides = array<i32>} : memref<32x128xf32, #tpu.memory_space<vmem>>, vector<32x128xf32>,
    %c0_3 = arith.constant 0 : index
    %c0_4 = arith.constant 0 : index
    %3 = tpu.strided_load %arg5[%c0_3, %c0_4] {strides = array<i32: 4, 1>} : memref<32x128xf32, #tpu.memory_space<vmem>>, vector<8x128xf32>
    %c1 = arith.constant 1 : index
    %c0_5 = arith.constant 0 : index
    %4 = tpu.strided_load %arg5[%c1, %c0_5] {strides = array<i32: 4, 1>} : memref<32x128xf32, #tpu.memory_space<vmem>>, vector<8x128xf32>
    %5 = arith.addf %3, %4 : vector<8x128xf32>
    %c2 = arith.constant 2 : index
    %c0_6 = arith.constant 0 : index
    %6 = tpu.strided_load %arg5[%c2, %c0_6] {strides = array<i32: 4, 1>} : memref<32x128xf32, #tpu.memory_space<vmem>>, vector<8x128xf32>
    %7 = arith.addf %5, %6 : vector<8x128xf32>
    %c3 = arith.constant 3 : index
    %c0_7 = arith.constant 0 : index
    %8 = tpu.strided_load %arg5[%c3, %c0_7] {strides = array<i32: 4, 1>} : memref<32x128xf32, #tpu.memory_space<vmem>>, vector<8x128xf32>
    %9 = arith.addf %7, %8 : vector<8x128xf32>
    %cst = arith.constant 2.500000e-01 : f32
    %10 = vector.broadcast %cst : f32 to vector<8x128xf32>
    %11 = arith.mulf %9, %10 : vector<8x128xf32>
    %12 = arith.truncf %11 : vector<8x128xf32> to vector<8x128xbf16>
    %c0_8 = arith.constant 0 : index
    %c0_9 = arith.constant 0 : index
    %13 = vector.load %arg2[%c0_8, %c0_9] : memref<128x128xbf16, #tpu.memory_space<vmem>>, vector<128x128xbf16>
    %cst_10 = arith.constant dense<0.000000e+00> : vector<8x128xf32>
    %14 = tpu.matmul %12, %13, %cst_10 {dimension_numbers = #tpu.dot_dimension_numbers<[1], [0], [0], [1], [0, 0, 1, 1], [], []>} : vector<8x128xbf16>, vector<128x128xbf16>, vector<8x128xf32> -> vector<8x128xf32>
    %cst_11 = arith.constant 0.000000e+00 : f32
    %15 = vector.broadcast %cst_11 : f32 to vector<8x128xf32>
    %16 = arith.maximumf %14, %15 : vector<8x128xf32>
    %17 = arith.truncf %16 : vector<8x128xf32> to vector<8x128xbf16>
    %c0_12 = arith.constant 0 : index
    %c0_13 = arith.constant 0 : index
    %18 = vector.load %arg3[%c0_12, %c0_13] : memref<128x128xbf16, #tpu.memory_space<vmem>>, vector<128x128xbf16>
    %cst_14 = arith.constant dense<0.000000e+00> : vector<8x128xf32>
    %19 = tpu.matmul %17, %18, %cst_14 {dimension_numbers = #tpu.dot_dimension_numbers<[1], [0], [0], [1], [0, 0, 1, 1], [], []>} : vector<8x128xbf16>, vector<128x128xbf16>, vector<8x128xf32> -> vector<8x128xf32>
    %20 = arith.truncf %19 : vector<8x128xf32> to vector<8x128xbf16>
    %c0_15 = arith.constant 0 : index
    %c0_16 = arith.constant 0 : index
    %21 = vector.load %arg4[%c0_15, %c0_16] : memref<8x128xbf16, #tpu.memory_space<vmem>>, vector<8x128xbf16>
    tpu.vector_store %arg4[%c0_15, %c0_16], %20 {strides = array<i32>} : memref<8x128xbf16, #tpu.memory_space<vmem>>, vector<8x128xbf16>,
    return
  }
  func.func @transform_0(%arg0: i32) -> (i32, i32) {
    %c0_i32 = arith.constant 0 : i32
    %c0_i32_0 = arith.constant 0 : i32
    return %arg0, %c0_i32 : i32, i32
  }
  func.func @transform_1(%arg0: i32) -> (i32, i32) {
    %c0_i32 = arith.constant 0 : i32
    %c0_i32_0 = arith.constant 0 : i32
    %c0_i32_1 = arith.constant 0 : i32
    return %c0_i32, %c0_i32_0 : i32, i32
  }
  func.func @transform_2(%arg0: i32) -> (i32, i32) {
    %c0_i32 = arith.constant 0 : i32
    %c0_i32_0 = arith.constant 0 : i32
    %c0_i32_1 = arith.constant 0 : i32
    return %c0_i32, %c0_i32_0 : i32, i32
  }
  func.func @transform_3(%arg0: i32) -> (i32, i32) {
    %c0_i32 = arith.constant 0 : i32
    %c0_i32_0 = arith.constant 0 : i32
    return %arg0, %c0_i32 : i32, i32
  }
}

</mosaic_0001>

<bundles_post_ra>
// kernel: classifier_forward.1
= control target key start
LH: loop header
LB: loop body
LE: loop exit
PB: predicated region body
PF: predicated region fallthrough
CT: control target
= control target key end

     0   :  { %v356_v0 = vmov 0.0   ;;  %vm357_vm0 = vmmov 0   ;;  %s453_s1 = inlined_call_operand.vmem [shape: bf16[128,128], index: 1, kind: input, shape index: {}]   ;;  %s454_s0 = inlined_call_operand.vmem [shape: bf16[32,128], index: 0, kind: input, shape index: {}]   ;;  %s455_s2 = inlined_call_operand.vmem [shape: bf16[128,128], index: 2, kind: input, shape index: {}]   ;;  %s456_s3 = inlined_call_operand.vmem [shape: bf16[8,128], index: 3, kind: output, shape index: {}]  }
   0x1   :  { %298 = vmatprep.subr.bf16.mxu0 %v356_v0  ;;  %v340_v1 = vld [vmem:[%s453_s1] sm:$0xff]   ;;  %314 = vmatprep.mubr.msk.bf16.mxu0 %vm357_vm0, %v356_v0  ;;  %v341_v2 = vld [vmem:[%s453_s1 + $0x8] sm:$0xff]   ;;  %v342_v3 = vld [vmem:[%s453_s1 + $0x10] sm:$0xff]  }
   0x2   :  { %318 = vmatprep.subr.bf16.mxu1 %v356_v0  ;;  %334 = vmatprep.mubr.msk.bf16.mxu1 %vm357_vm0, %v356_v0  ;;  %v272_v4 = vld [vmem:[%s454_s0] sm:$0xff]   ;;  %v279_v5 = vld [vmem:[%s454_s0 + $0x8] sm:$0xff]   ;;  %v343_v11 = vld [vmem:[%s453_s1 + $0x18] sm:$0xff]  }
   0x3   :  { %299 = vmatpush3.bf16.msra.mxu0 %v340_v1  ;;  %v273_v6 = vunpack.c.l.bf16 %v272_v4  ;;  %v274_v7 = vunpack.c.h.bf16 %v272_v4  ;;  %v277_v8 = vunpack.c.l.bf16 %v279_v5  ;;  %v278_v9 = vunpack.c.h.bf16 %v279_v5  ;;  %v348_v10 = vld [vmem:[%s455_s2] sm:$0xff]   ;;  %v349_v12 = vld [vmem:[%s455_s2 + $0x8] sm:$0xff]   ;;  %v350_v14 = vld [vmem:[%s455_s2 + $0x10] sm:$0xff]  }
   0x4   :  { %300 = vmatprep.subr.bf16.mxu0 %v356_v0  ;;  %319 = vmatpush3.bf16.msra.mxu1 %v348_v10  ;;  %v344_v13 = vld [vmem:[%s453_s1 + $0x20] sm:$0xff]   ;;  %v345_v15 = vld [vmem:[%s453_s1 + $0x28] sm:$0xff]   ;;  %v351_v20 = vld [vmem:[%s455_s2 + $0x18] sm:$0xff]  }
   0x5   :  { %23 = vst [vmem:[#allocation2] sm:$0xff] %v273_v6  ;;  %24 = vst [vmem:[#allocation2 + $0x8] sm:$0xff] %v274_v7  ;;  %320 = vmatprep.subr.bf16.mxu1 %v356_v0  ;;  %v346_v23 = vld [vmem:[%s453_s1 + $0x30] sm:$0xff]   ;;  %v352_v25 = vld [vmem:[%s455_s2 + $0x20] sm:$0xff]  }
   0x6   :  { %25 = vst [vmem:[#allocation2 + $0x10] sm:$0xff] %v277_v8  ;;  %26 = vst [vmem:[#allocation2 + $0x18] sm:$0xff] %v278_v9  ;;  %v347_v27 = vld [vmem:[%s453_s1 + $0x38] sm:$0xff]   ;;  %v353_v28 = vld [vmem:[%s455_s2 + $0x28] sm:$0xff]  }
   0x7   :  { %301 = vmatpush3.bf16.msra.mxu0 %v341_v2  ;;  %v354_v30 = vld [vmem:[%s455_s2 + $0x30] sm:$0xff]   ;;  %v355_v31 = vld [vmem:[%s455_s2 + $0x38] sm:$0xff]  }
   0x8   :  { %302 = vmatprep.subr.bf16.mxu0 %v356_v0  ;;  %321 = vmatpush3.bf16.msra.mxu1 %v349_v12 }
   0x9   :  { %322 = vmatprep.subr.bf16.mxu1 %v356_v0 }
   0xb   :  { %303 = vmatpush3.bf16.msra.mxu0 %v342_v3 }
   0xc   :  { %304 = vmatprep.subr.bf16.mxu0 %v356_v0  ;;  %323 = vmatpush3.bf16.msra.mxu1 %v350_v14 }
   0xd   :  { %v27_v16 = vld [vmem:[#allocation2] ss:$4 sm:$0xff]  ;;  %v29_v17 = vld [vmem:[#allocation2 + $0x1] ss:$4 sm:$0xff]  ;;  %v32_v18 = vld [vmem:[#allocation2 + $0x2] ss:$4 sm:$0xff]  ;;  %324 = vmatprep.subr.bf16.mxu1 %v356_v0 }
   0xe   :  { %v30_v19 = vadd.f32 %v29_v17, %v27_v16  ;;  %v35_v21 = vld [vmem:[#allocation2 + $0x3] ss:$4 sm:$0xff] }
   0xf   :  { %305 = vmatpush3.bf16.msra.mxu0 %v343_v11 }
  0x10   :  { %306 = vmatprep.subr.bf16.mxu0 %v356_v0  ;;  %v33_v22 = vadd.f32 %v32_v18, %v30_v19  ;;  %325 = vmatpush3.bf16.msra.mxu1 %v351_v20 }
  0x11   :  { %326 = vmatprep.subr.bf16.mxu1 %v356_v0 }
  0x12   :  { %v36_v24 = vadd.f32 %v35_v21, %v33_v22 }
  0x13   :  { %307 = vmatpush3.bf16.msra.mxu0 %v344_v13 }
  0x14   :  { %308 = vmatprep.subr.bf16.mxu0 %v356_v0  ;;  %v37_v26 = vmul.f32 0.25, %v36_v24  ;;  %327 = vmatpush3.bf16.msra.mxu1 %v352_v25 }
  0x15   :  { %328 = vmatprep.subr.bf16.mxu1 %v356_v0 }
  0x16   :  { %v38_v29 = vpack.c.bf16 %v37_v26, %v37_v26 }
  0x17   :  { %309 = vmatpush3.bf16.msra.mxu0 %v345_v15 }
  0x18   :  { %310 = vmatprep.subr.bf16.mxu0 %v356_v0  ;;  %329 = vmatpush3.bf16.msra.mxu1 %v353_v28 }
  0x19   :  { %330 = vmatprep.subr.bf16.mxu1 %v356_v0 }
  0x1b   :  { %311 = vmatpush3.bf16.msra.mxu0 %v346_v23 }
  0x1c   :  { %312 = vmatprep.subr.bf16.mxu0 %v356_v0  ;;  %331 = vmatpush3.bf16.msra.mxu1 %v354_v30 }
  0x1d   :  { %332 = vmatprep.subr.bf16.mxu1 %v356_v0 }
  0x1f   :  { %313 = vmatpush3.bf16.msra.mxu0 %v347_v27 }
  0x20   :  { %333 = vmatpush3.bf16.msra.mxu1 %v355_v31 }
  0x22   :  { %315 = vmatmul.mubr.bf16.vlgmr.msra.gmra.mrb[0].mxu0 %v38_v29 }
  0xf5   :  { %v137_v32 = vpop.f32.mrb[0].mxu0 }
  0xf6   :  { %v143_v33 = vmax.f32 %v137_v32, 0.0  ;;  %v316_v34 = vpop.f32.mrb[1].mxu0 }
  0xf7   :  { %v140_v35 = vpop.f32.mrb[2].mxu0 }
  0xf8   :  { %v144_v36 = vpack.c.bf16 %v143_v33, %v143_v33  ;;  %v317_v37 = vpop.f32.mrb[3].mxu0 }
  0xfa   :  { %335 = vmatmul.mubr.bf16.vlgmr.msra.gmra.mrb[0].mxu1 %v144_v36 }
 0x1cd   :  { %v243_v38 = vpop.f32.mrb[0].mxu1 }
 0x1ce   :  { %v249_v39 = vpack.c.bf16 %v243_v38, %v243_v38  ;;  %v336_v40 = vpop.f32.mrb[1].mxu1 }
 0x1cf   :  { %v246_v41 = vpop.f32.mrb[2].mxu1 }
 0x1d0   :  { %250 = vst [vmem:[%s456_s3] sm:$0xf] %v249_v39  ;;  %v337_v42 = vpop.f32.mrb[3].mxu1 }

</bundles_post_ra>
